<compile_context>
chip_gen: v7x
topology: tpu7x:2x2x1
jax: 0.10.0
libtpu: 0.0.40
codegen_flags: <defaults>
</compile_context>

<pallas_src>
import jax
import jax.numpy as jnp
import numpy as np
from jax.experimental import pallas as pl
from jax.experimental.pallas import tpu as pltpu

# ---- sizes (small, consistent with the module's forward) ----
B, IN, H, HY, NZ = 8, 16, 32, 16, 8
EPS = 1e-5                         # torch.nn.LayerNorm default eps
XCAT = HY + H + IN                 # 64   : [h_hat | h | x]
G_HYP = 4 * HY                     # 64   : inner-LSTM gate slab width
G_MAIN = 4 * H                     # 128  : main-LSTM gate slab width
Z_W = 12 * NZ                      # 96   : [z_h | z_x | z_b]
D_W = 3 * G_MAIN                   # 384  : [d_h | d_x | d_b]
OUT_W = 128                        # lane-dense output slab
PAD_W = OUT_W - (2 * H + 2 * HY)   # 32


def hyper_lstm_kernel(
    # state
    xcat_ref, c_ref, chat_ref,
    # packed weights
    w_hyper_ref, w_main_ref, w_z_ref, w_d_ref,
    # block-diagonal segment-averaging matrices (for per-gate LayerNorm)
    m_avg_hyp_ref, m_avg_main_ref,
    # packed biases / LayerNorm gammas & betas (rows of a (16,128) slab)
    vec_ref,
    # single packed output
    out_ref,
):
    f32 = jnp.float32
    xcat = xcat_ref[...]                       # (B, 64)  = [h_hat | h | x]
    c = c_ref[...]                             # (B, H)
    c_hat = chat_ref[...]                      # (B, HY)

    # ------------- inner (hyper) LayerNorm LSTM: one (B, 4*HY) slab -------------
    ifgo_hat = (jnp.dot(xcat, w_hyper_ref[...], preferred_element_type=f32)
                + vec_ref[0:1, 0:G_HYP])                       # + hidden_lin bias
    m_hyp = m_avg_hyp_ref[...]
    mu = jnp.dot(ifgo_hat, m_hyp, preferred_element_type=f32)   # per-gate mean
    cen = ifgo_hat - mu
    var = jnp.dot(cen * cen, m_hyp, preferred_element_type=f32)  # per-gate var
    g_hat = (cen * jax.lax.rsqrt(var + EPS) * vec_ref[1:2, 0:G_HYP]
             + vec_ref[2:3, 0:G_HYP])

    sig_hat = jax.nn.sigmoid(g_hat)
    tanh_hat = jnp.tanh(g_hat)
    i_h = sig_hat[:, 0:HY]
    f_h = sig_hat[:, HY:2 * HY]
    g_h = tanh_hat[:, 2 * HY:3 * HY]
    o_h = sig_hat[:, 3 * HY:4 * HY]
    c_hat_next = f_h * c_hat + i_h * g_h

    mu_c = jnp.mean(c_hat_next, axis=-1, keepdims=True)
    var_c = jnp.mean(jnp.square(c_hat_next - mu_c), axis=-1, keepdims=True)
    c_hat_ln = ((c_hat_next - mu_c) * jax.lax.rsqrt(var_c + EPS)
                * vec_ref[3:4, 0:HY] + vec_ref[4:5, 0:HY])
    h_hat_next = o_h * jnp.tanh(c_hat_ln)

    # ------------- hyper projections: fused z, block-diagonal d -------------
    z_all = (jnp.dot(h_hat_next, w_z_ref[...], preferred_element_type=f32)
             + vec_ref[5:6, 0:Z_W])                            # (B, 96)
    d_all = jnp.dot(z_all, w_d_ref[...], preferred_element_type=f32)  # (B, 384)
    d_h = d_all[:, 0:G_MAIN]                    # vreg-aligned (128-lane) slices
    d_x = d_all[:, G_MAIN:2 * G_MAIN]
    d_b = d_all[:, 2 * G_MAIN:3 * G_MAIN] + vec_ref[6:7, 0:G_MAIN]

    # ------------- main LSTM: [h@Wh | x@Wx] for all 4 gates, one matmul -------------
    hx_all = jnp.dot(xcat, w_main_ref[...], preferred_element_type=f32)  # (B, 256)
    wh_all = hx_all[:, 0:G_MAIN]
    wx_all = hx_all[:, G_MAIN:2 * G_MAIN]
    y = d_h * wh_all + d_x * wx_all + d_b        # (B, 128) full-vreg slab

    m_main = m_avg_main_ref[...]
    mu_y = jnp.dot(y, m_main, preferred_element_type=f32)
    cen_y = y - mu_y
    var_y = jnp.dot(cen_y * cen_y, m_main, preferred_element_type=f32)
    g_main = (cen_y * jax.lax.rsqrt(var_y + EPS) * vec_ref[7:8, 0:G_MAIN]
              + vec_ref[8:9, 0:G_MAIN])

    sig_m = jax.nn.sigmoid(g_main)
    tanh_m = jnp.tanh(g_main)
    i_g = sig_m[:, 0:H]
    f_g = sig_m[:, H:2 * H]
    g_g = tanh_m[:, 2 * H:3 * H]
    o_g = sig_m[:, 3 * H:4 * H]
    c_next = f_g * c + i_g * g_g

    mu_cn = jnp.mean(c_next, axis=-1, keepdims=True)
    var_cn = jnp.mean(jnp.square(c_next - mu_cn), axis=-1, keepdims=True)
    c_next_ln = ((c_next - mu_cn) * jax.lax.rsqrt(var_cn + EPS)
                 * vec_ref[9:10, 0:H] + vec_ref[10:11, 0:H])
    h_next = o_g * jnp.tanh(c_next_ln)

    # single lane-dense output slab: [h | c | h_hat | c_hat | pad] -> (B, 128)
    pad = jnp.zeros((h_next.shape[0], PAD_W), f32)
    out_ref[...] = jnp.concatenate(
        [h_next, c_next, h_hat_next, c_hat_next, pad], axis=-1)


@jax.jit
def hyper_lstm_cell(x, h, c, h_hat, c_hat, packed):
    xcat = jnp.concatenate([h_hat, h, x], axis=-1)   # (B, 64), free in XLA
    args = (xcat, c, c_hat,
            packed["w_hyper"], packed["w_main"], packed["w_z"], packed["w_d"],
            packed["m_avg_hyp"], packed["m_avg_main"], packed["vec"])
    vmem = pl.BlockSpec(memory_space=pltpu.MemorySpace.VMEM)
    out = pl.pallas_call(
        hyper_lstm_kernel,
        out_shape=jax.ShapeDtypeStruct((B, OUT_W), jnp.float32),
        in_specs=[vmem] * len(args),
        out_specs=vmem,
    )(*args)
    h_n = out[:, 0:H]
    c_n = out[:, H:2 * H]
    hh_n = out[:, 2 * H:2 * H + HY]
    ch_n = out[:, 2 * H + HY:2 * H + 2 * HY]
    return h_n, c_n, hh_n, ch_n


# --------------------------- parameter construction ---------------------------

def make_params(key):
    """Logical parameters (pre-transposed to (in_features, out_features))."""
    ks = list(jax.random.split(key, 20))

    def rnd(k, shape, scale=0.2):
        return (scale * jax.random.normal(k, shape)).astype(jnp.float32)

    p = {}
    # inner hyper LSTM: hidden_lin (HY -> 4HY, bias), input_lin (H+IN -> 4HY, no bias)
    p["whh"] = rnd(ks[0], (HY, 4 * HY))
    p["bhh"] = rnd(ks[1], (1, 4 * HY))
    whx = rnd(ks[2], (H + IN, 4 * HY))
    p["whx_h"], p["whx_x"] = whx[:H, :], whx[H:, :]
    # inner LSTM layer norms: 4 gates + cell
    p["lnhyp_g"] = (1.0 + 0.1 * jax.random.normal(ks[3], (5, HY))).astype(jnp.float32)
    p["lnhyp_b"] = rnd(ks[4], (5, HY), 0.1)
    # z projections
    p["wzh"] = rnd(ks[5], (HY, 4 * NZ))
    p["bzh"] = rnd(ks[6], (1, 4 * NZ))
    p["wzx"] = rnd(ks[7], (HY, 4 * NZ))
    p["bzx"] = rnd(ks[8], (1, 4 * NZ))
    p["wzb"] = rnd(ks[9], (HY, 4 * NZ))
    # d projections (rows i*NZ:(i+1)*NZ belong to gate i)
    p["wdh"] = rnd(ks[10], (4 * NZ, H))
    p["wdx"] = rnd(ks[11], (4 * NZ, H))
    p["wdb"] = rnd(ks[12], (4 * NZ, H))
    p["bdb"] = rnd(ks[13], (4, H))
    # main LSTM weights: columns i*H:(i+1)*H = w_h[i].T / w_x[i].T
    # (module inits these to zero; random values exercise the einsum path)
    p["wht"] = rnd(ks[14], (H, 4 * H))
    p["wxt"] = rnd(ks[15], (IN, 4 * H))
    # main layer norms
    p["ln_g"] = (1.0 + 0.1 * jax.random.normal(ks[16], (4, H))).astype(jnp.float32)
    p["ln_b"] = rnd(ks[17], (4, H), 0.1)
    p["lnc_g"] = (1.0 + 0.1 * jax.random.normal(ks[18], (1, H))).astype(jnp.float32)
    p["lnc_b"] = rnd(ks[19], (1, H), 0.1)
    return p


def pack_params(p):
    """Pack the 21 logical tensors into 7 lane-dense kernel slabs (built once)."""
    npf = np.float32
    # [h_hat; h; x] -> 4*HY   (inner hyper-LSTM input projection, fused)
    w_hyper = np.concatenate(
        [np.asarray(p["whh"]), np.asarray(p["whx_h"]), np.asarray(p["whx_x"])],
        axis=0).astype(npf)                                     # (64, 64)
    # [h_hat; h; x] -> [h@Wh_all | x@Wx_all]
    w_main = np.zeros((XCAT, 2 * G_MAIN), npf)                  # (64, 256)
    w_main[HY:HY + H, 0:G_MAIN] = np.asarray(p["wht"])
    w_main[HY + H:, G_MAIN:2 * G_MAIN] = np.asarray(p["wxt"])
    # fused z projection: h_hat_next -> [z_h | z_x | z_b]
    w_z = np.concatenate(
        [np.asarray(p["wzh"]), np.asarray(p["wzx"]), np.asarray(p["wzb"])],
        axis=1).astype(npf)                                     # (16, 96)
    # block-diagonal d projection: [z_h|z_x|z_b] -> [d_h_all | d_x_all | d_b_all]
    w_d = np.zeros((Z_W, D_W), npf)                             # (96, 384)
    wdh, wdx, wdb = (np.asarray(p["wdh"]), np.asarray(p["wdx"]), np.asarray(p["wdb"]))
    for g in range(4):
        rs, re = g * NZ, (g + 1) * NZ
        cs, ce = g * H, (g + 1) * H
        w_d[rs:re, cs:ce] = wdh[rs:re]
        w_d[4 * NZ + rs:4 * NZ + re, G_MAIN + cs:G_MAIN + ce] = wdx[rs:re]
        w_d[8 * NZ + rs:8 * NZ + re, 2 * G_MAIN + cs:2 * G_MAIN + ce] = wdb[rs:re]
    # block-diagonal averaging matrices: segment mean via MXU
    m_avg_hyp = np.kron(np.eye(4, dtype=npf), np.full((HY, HY), 1.0 / HY, npf))
    m_avg_main = np.kron(np.eye(4, dtype=npf), np.full((H, H), 1.0 / H, npf))
    # vector slab: biases and LN gammas/betas, one row each (padded to 128 lanes)
    vec = np.zeros((16, 128), npf)

    def put(row, v):
        v = np.asarray(v, dtype=npf).reshape(-1)
        vec[row, :v.shape[0]] = v

    put(0, p["bhh"])                                   # inner hidden_lin bias (64)
    put(1, np.asarray(p["lnhyp_g"])[:4])               # inner gate LN gamma  (64)
    put(2, np.asarray(p["lnhyp_b"])[:4])               # inner gate LN beta   (64)
    put(3, np.asarray(p["lnhyp_g"])[4])                # inner cell LN gamma  (16)
    put(4, np.asarray(p["lnhyp_b"])[4])                # inner cell LN beta   (16)
    put(5, np.concatenate([np.asarray(p["bzh"]).reshape(-1),
                           np.asarray(p["bzx"]).reshape(-1),
                           np.zeros(4 * NZ, npf)]))    # z bias [bzh|bzx|0]   (96)
    put(6, p["bdb"])                                   # d_b bias            (128)
    put(7, p["ln_g"])                                  # main gate LN gamma  (128)
    put(8, p["ln_b"])                                  # main gate LN beta   (128)
    put(9, p["lnc_g"])                                 # main cell LN gamma   (32)
    put(10, p["lnc_b"])                                # main cell LN beta    (32)

    return dict(
        w_hyper=jnp.asarray(w_hyper), w_main=jnp.asarray(w_main),
        w_z=jnp.asarray(w_z), w_d=jnp.asarray(w_d),
        m_avg_hyp=jnp.asarray(m_avg_hyp), m_avg_main=jnp.asarray(m_avg_main),
        vec=jnp.asarray(vec))


# ------------------------------- reference -------------------------------

def reference(x, h, c, h_hat, c_hat, p):
    """Pure-JAX reference replicating the PyTorch forward (unfused)."""
    def ln(v, g, b):
        mu = v.mean(-1, keepdims=True)
        var = ((v - mu) ** 2).mean(-1, keepdims=True)
        return (v - mu) / jnp.sqrt(var + EPS) * g + b

    ifgo_hat = h_hat @ p["whh"] + p["bhh"] + h @ p["whx_h"] + x @ p["whx_x"]
    gh = [ln(ifgo_hat[:, i * HY:(i + 1) * HY], p["lnhyp_g"][i], p["lnhyp_b"][i])
          for i in range(4)]
    ih, fh, gg, oh = gh
    c_hat_n = jax.nn.sigmoid(fh) * c_hat + jax.nn.sigmoid(ih) * jnp.tanh(gg)
    h_hat_n = jax.nn.sigmoid(oh) * jnp.tanh(ln(c_hat_n, p["lnhyp_g"][4], p["lnhyp_b"][4]))

    z_h = h_hat_n @ p["wzh"] + p["bzh"]
    z_x = h_hat_n @ p["wzx"] + p["bzx"]
    z_b = h_hat_n @ p["wzb"]
    gates = []
    for i in range(4):
        dh = z_h[:, i * NZ:(i + 1) * NZ] @ p["wdh"][i * NZ:(i + 1) * NZ]
        dx = z_x[:, i * NZ:(i + 1) * NZ] @ p["wdx"][i * NZ:(i + 1) * NZ]
        db = z_b[:, i * NZ:(i + 1) * NZ] @ p["wdb"][i * NZ:(i + 1) * NZ] + p["bdb"][i]
        y = (dh * (h @ p["wht"][:, i * H:(i + 1) * H])
             + dx * (x @ p["wxt"][:, i * H:(i + 1) * H]) + db)
        gates.append(ln(y, p["ln_g"][i], p["ln_b"][i]))
    ig, fg, gg2, og = gates
    c_n = jax.nn.sigmoid(fg) * c + jax.nn.sigmoid(ig) * jnp.tanh(gg2)
    h_n = jax.nn.sigmoid(og) * jnp.tanh(ln(c_n, p["lnc_g"][0], p["lnc_b"][0]))
    return h_n, c_n, h_hat_n, c_hat_n


if __name__ == "__main__":
    key = jax.random.PRNGKey(0)
    k_in, k_p = jax.random.split(key)
    kx, kh, kc, khh, kch = jax.random.split(k_in, 5)

    x = jax.random.normal(kx, (B, IN), jnp.float32)
    h = jax.random.normal(kh, (B, H), jnp.float32)
    c = jax.random.normal(kc, (B, H), jnp.float32)
    h_hat = jax.random.normal(khh, (B, HY), jnp.float32)
    c_hat = jax.random.normal(kch, (B, HY), jnp.float32)

    params = make_params(k_p)
    packed = pack_params(params)

    out = jax.block_until_ready(hyper_lstm_cell(x, h, c, h_hat, c_hat, packed))
    ref = reference(x, h, c, h_hat, c_hat, params)

    for o, r in zip(out, ref):
        np.testing.assert_allclose(np.asarray(o), np.asarray(r), rtol=2e-5, atol=2e-5)

    print("KERNEL_OK")
</pallas_src>

<mosaic_0001>
module attributes {stable_mosaic.version = 11 : i64} {
  func.func @hyper_lstm_kernel(%arg0: memref<8x64xf32, #tpu.memory_space<vmem>>, %arg1: memref<8x32xf32, #tpu.memory_space<vmem>>, %arg2: memref<8x16xf32, #tpu.memory_space<vmem>>, %arg3: memref<64x64xf32, #tpu.memory_space<vmem>>, %arg4: memref<64x256xf32, #tpu.memory_space<vmem>>, %arg5: memref<16x96xf32, #tpu.memory_space<vmem>>, %arg6: memref<96x384xf32, #tpu.memory_space<vmem>>, %arg7: memref<64x64xf32, #tpu.memory_space<vmem>>, %arg8: memref<128x128xf32, #tpu.memory_space<vmem>>, %arg9: memref<16x128xf32, #tpu.memory_space<vmem>>, %arg10: memref<8x128xf32, #tpu.memory_space<vmem>>) attributes {dimension_semantics = [], scalar_prefetch = 0 : i64, scratch_operands = 0 : i64, tpu.core_type = #tpu.core_type<tc>} {
    %c0 = arith.constant 0 : index
    %c0_0 = arith.constant 0 : index
    %0 = vector.load %arg0[%c0, %c0_0] : memref<8x64xf32, #tpu.memory_space<vmem>>, vector<8x64xf32>
    %c0_1 = arith.constant 0 : index
    %c0_2 = arith.constant 0 : index
    %1 = vector.load %arg1[%c0_1, %c0_2] : memref<8x32xf32, #tpu.memory_space<vmem>>, vector<8x32xf32>
    %c0_3 = arith.constant 0 : index
    %c0_4 = arith.constant 0 : index
    %2 = vector.load %arg2[%c0_3, %c0_4] : memref<8x16xf32, #tpu.memory_space<vmem>>, vector<8x16xf32>
    %c0_5 = arith.constant 0 : index
    %c0_6 = arith.constant 0 : index
    %3 = vector.load %arg3[%c0_5, %c0_6] : memref<64x64xf32, #tpu.memory_space<vmem>>, vector<64x64xf32>
    %cst = arith.constant dense<0.000000e+00> : vector<8x64xf32>
    %4 = tpu.matmul %0, %3, %cst {dimension_numbers = #tpu.dot_dimension_numbers<[1], [0], [0], [1], [0, 0, 1, 1], [], []>} : vector<8x64xf32>, vector<64x64xf32>, vector<8x64xf32> -> vector<8x64xf32>
    %c0_7 = arith.constant 0 : index
    %c0_8 = arith.constant 0 : index
    %5 = vector.load %arg9[%c0_7, %c0_8] : memref<16x128xf32, #tpu.memory_space<vmem>>, vector<1x64xf32>
    %6 = vector.broadcast %5 : vector<1x64xf32> to vector<8x64xf32>
    %7 = arith.addf %4, %6 : vector<8x64xf32>
    %c0_9 = arith.constant 0 : index
    %c0_10 = arith.constant 0 : index
    %8 = vector.load %arg7[%c0_9, %c0_10] : memref<64x64xf32, #tpu.memory_space<vmem>>, vector<64x64xf32>
    %cst_11 = arith.constant dense<0.000000e+00> : vector<8x64xf32>
    %9 = tpu.matmul %7, %8, %cst_11 {dimension_numbers = #tpu.dot_dimension_numbers<[1], [0], [0], [1], [0, 0, 1, 1], [], []>} : vector<8x64xf32>, vector<64x64xf32>, vector<8x64xf32> -> vector<8x64xf32>
    %10 = arith.subf %7, %9 : vector<8x64xf32>
    %11 = arith.mulf %10, %10 : vector<8x64xf32>
    %cst_12 = arith.constant dense<0.000000e+00> : vector<8x64xf32>
    %12 = tpu.matmul %11, %8, %cst_12 {dimension_numbers = #tpu.dot_dimension_numbers<[1], [0], [0], [1], [0, 0, 1, 1], [], []>} : vector<8x64xf32>, vector<64x64xf32>, vector<8x64xf32> -> vector<8x64xf32>
    %cst_13 = arith.constant 9.99999974E-6 : f32
    %13 = vector.broadcast %cst_13 : f32 to vector<8x64xf32>
    %14 = arith.addf %12, %13 : vector<8x64xf32>
    %15 = math.rsqrt %14 : vector<8x64xf32>
    %16 = arith.mulf %10, %15 : vector<8x64xf32>
    %c1 = arith.constant 1 : index
    %c0_14 = arith.constant 0 : index
    %17 = vector.load %arg9[%c1, %c0_14] : memref<16x128xf32, #tpu.memory_space<vmem>>, vector<1x64xf32>
    %18 = vector.broadcast %17 : vector<1x64xf32> to vector<8x64xf32>
    %19 = arith.mulf %16, %18 : vector<8x64xf32>
    %c2 = arith.constant 2 : index
    %c0_15 = arith.constant 0 : index
    %20 = vector.load %arg9[%c2, %c0_15] : memref<16x128xf32, #tpu.memory_space<vmem>>, vector<1x64xf32>
    %21 = vector.broadcast %20 : vector<1x64xf32> to vector<8x64xf32>
    %22 = arith.addf %19, %21 : vector<8x64xf32>
    %23 = arith.negf %22 : vector<8x64xf32>
    %24 = math.exp %23 : vector<8x64xf32>
    %cst_16 = arith.constant 1.000000e+00 : f32
    %25 = vector.broadcast %cst_16 : f32 to vector<8x64xf32>
    %26 = arith.addf %25, %24 : vector<8x64xf32>
    %27 = arith.divf %25, %26 : vector<8x64xf32>
    %28 = math.tanh %22 : vector<8x64xf32>
    %29 = vector.extract_strided_slice %27 {offsets = [0, 0], sizes = [8, 16], strides = [1, 1]} : vector<8x64xf32> to vector<8x16xf32>
    %30 = vector.extract_strided_slice %27 {offsets = [0, 16], sizes = [8, 16], strides = [1, 1]} : vector<8x64xf32> to vector<8x16xf32>
    %31 = vector.extract_strided_slice %28 {offsets = [0, 32], sizes = [8, 16], strides = [1, 1]} : vector<8x64xf32> to vector<8x16xf32>
    %32 = vector.extract_strided_slice %27 {offsets = [0, 48], sizes = [8, 16], strides = [1, 1]} : vector<8x64xf32> to vector<8x16xf32>
    %33 = arith.mulf %30, %2 : vector<8x16xf32>
    %34 = arith.mulf %29, %31 : vector<8x16xf32>
    %35 = arith.addf %33, %34 : vector<8x16xf32>
    %cst_17 = arith.constant dense<0.000000e+00> : vector<8xf32>
    %36 = vector.multi_reduction <add>, %35, %cst_17 [1] : vector<8x16xf32> to vector<8xf32>
    %37 = vector.shape_cast %36 : vector<8xf32> to vector<8x1xf32>
    %cst_18 = arith.constant 1.600000e+01 : f32
    %38 = vector.broadcast %cst_18 : f32 to vector<8x1xf32>
    %39 = arith.divf %37, %38 : vector<8x1xf32>
    %40 = vector.broadcast %39 : vector<8x1xf32> to vector<8x16xf32>
    %41 = arith.subf %35, %40 : vector<8x16xf32>
    %42 = arith.mulf %41, %41 : vector<8x16xf32>
    %cst_19 = arith.constant dense<0.000000e+00> : vector<8xf32>
    %43 = vector.multi_reduction <add>, %42, %cst_19 [1] : vector<8x16xf32> to vector<8xf32>
    %44 = vector.shape_cast %43 : vector<8xf32> to vector<8x1xf32>
    %cst_20 = arith.constant 1.600000e+01 : f32
    %45 = vector.broadcast %cst_20 : f32 to vector<8x1xf32>
    %46 = arith.divf %44, %45 : vector<8x1xf32>
    %47 = vector.broadcast %39 : vector<8x1xf32> to vector<8x16xf32>
    %48 = arith.subf %35, %47 : vector<8x16xf32>
    %cst_21 = arith.constant 9.99999974E-6 : f32
    %49 = vector.broadcast %cst_21 : f32 to vector<8x1xf32>
    %50 = arith.addf %46, %49 : vector<8x1xf32>
    %51 = math.rsqrt %50 : vector<8x1xf32>
    %52 = vector.broadcast %51 : vector<8x1xf32> to vector<8x16xf32>
    %53 = arith.mulf %48, %52 : vector<8x16xf32>
    %c3 = arith.constant 3 : index
    %c0_22 = arith.constant 0 : index
    %54 = vector.load %arg9[%c3, %c0_22] : memref<16x128xf32, #tpu.memory_space<vmem>>, vector<1x16xf32>
    %55 = vector.broadcast %54 : vector<1x16xf32> to vector<8x16xf32>
    %56 = arith.mulf %53, %55 : vector<8x16xf32>
    %c4 = arith.constant 4 : index
    %c0_23 = arith.constant 0 : index
    %57 = vector.load %arg9[%c4, %c0_23] : memref<16x128xf32, #tpu.memory_space<vmem>>, vector<1x16xf32>
    %58 = vector.broadcast %57 : vector<1x16xf32> to vector<8x16xf32>
    %59 = arith.addf %56, %58 : vector<8x16xf32>
    %60 = math.tanh %59 : vector<8x16xf32>
    %61 = arith.mulf %32, %60 : vector<8x16xf32>
    %c0_24 = arith.constant 0 : index
    %c0_25 = arith.constant 0 : index
    %62 = vector.load %arg5[%c0_24, %c0_25] : memref<16x96xf32, #tpu.memory_space<vmem>>, vector<16x96xf32>
    %cst_26 = arith.constant dense<0.000000e+00> : vector<8x96xf32>
    %63 = tpu.matmul %61, %62, %cst_26 {dimension_numbers = #tpu.dot_dimension_numbers<[1], [0], [0], [1], [0, 0, 1, 1], [], []>} : vector<8x16xf32>, vector<16x96xf32>, vector<8x96xf32> -> vector<8x96xf32>
    %c5 = arith.constant 5 : index
    %c0_27 = arith.constant 0 : index
    %64 = vector.load %arg9[%c5, %c0_27] : memref<16x128xf32, #tpu.memory_space<vmem>>, vector<1x96xf32>
    %65 = vector.broadcast %64 : vector<1x96xf32> to vector<8x96xf32>
    %66 = arith.addf %63, %65 : vector<8x96xf32>
    %c0_28 = arith.constant 0 : index
    %c0_29 = arith.constant 0 : index
    %67 = vector.load %arg6[%c0_28, %c0_29] : memref<96x384xf32, #tpu.memory_space<vmem>>, vector<96x384xf32>
    %cst_30 = arith.constant dense<0.000000e+00> : vector<8x384xf32>
    %68 = tpu.matmul %66, %67, %cst_30 {dimension_numbers = #tpu.dot_dimension_numbers<[1], [0], [0], [1], [0, 0, 1, 1], [], []>} : vector<8x96xf32>, vector<96x384xf32>, vector<8x384xf32> -> vector<8x384xf32>
    %69 = vector.extract_strided_slice %68 {offsets = [0, 0], sizes = [8, 128], strides = [1, 1]} : vector<8x384xf32> to vector<8x128xf32>
    %70 = vector.extract_strided_slice %68 {offsets = [0, 128], sizes = [8, 128], strides = [1, 1]} : vector<8x384xf32> to vector<8x128xf32>
    %71 = vector.extract_strided_slice %68 {offsets = [0, 256], sizes = [8, 128], strides = [1, 1]} : vector<8x384xf32> to vector<8x128xf32>
    %c6 = arith.constant 6 : index
    %c0_31 = arith.constant 0 : index
    %72 = vector.load %arg9[%c6, %c0_31] : memref<16x128xf32, #tpu.memory_space<vmem>>, vector<1x128xf32>
    %73 = vector.broadcast %72 : vector<1x128xf32> to vector<8x128xf32>
    %74 = arith.addf %71, %73 : vector<8x128xf32>
    %c0_32 = arith.constant 0 : index
    %c0_33 = arith.constant 0 : index
    %75 = vector.load %arg4[%c0_32, %c0_33] : memref<64x256xf32, #tpu.memory_space<vmem>>, vector<64x256xf32>
    %cst_34 = arith.constant dense<0.000000e+00> : vector<8x256xf32>
    %76 = tpu.matmul %0, %75, %cst_34 {dimension_numbers = #tpu.dot_dimension_numbers<[1], [0], [0], [1], [0, 0, 1, 1], [], []>} : vector<8x64xf32>, vector<64x256xf32>, vector<8x256xf32> -> vector<8x256xf32>
    %77 = vector.extract_strided_slice %76 {offsets = [0, 0], sizes = [8, 128], strides = [1, 1]} : vector<8x256xf32> to vector<8x128xf32>
    %78 = vector.extract_strided_slice %76 {offsets = [0, 128], sizes = [8, 128], strides = [1, 1]} : vector<8x256xf32> to vector<8x128xf32>
    %79 = arith.mulf %69, %77 : vector<8x128xf32>
    %80 = arith.mulf %70, %78 : vector<8x128xf32>
    %81 = arith.addf %79, %80 : vector<8x128xf32>
    %82 = arith.addf %81, %74 : vector<8x128xf32>
    %c0_35 = arith.constant 0 : index
    %c0_36 = arith.constant 0 : index
    %83 = vector.load %arg8[%c0_35, %c0_36] : memref<128x128xf32, #tpu.memory_space<vmem>>, vector<128x128xf32>
    %cst_37 = arith.constant dense<0.000000e+00> : vector<8x128xf32>
    %84 = tpu.matmul %82, %83, %cst_37 {dimension_numbers = #tpu.dot_dimension_numbers<[1], [0], [0], [1], [0, 0, 1, 1], [], []>} : vector<8x128xf32>, vector<128x128xf32>, vector<8x128xf32> -> vector<8x128xf32>
    %85 = arith.subf %82, %84 : vector<8x128xf32>
    %86 = arith.mulf %85, %85 : vector<8x128xf32>
    %cst_38 = arith.constant dense<0.000000e+00> : vector<8x128xf32>
    %87 = tpu.matmul %86, %83, %cst_38 {dimension_numbers = #tpu.dot_dimension_numbers<[1], [0], [0], [1], [0, 0, 1, 1], [], []>} : vector<8x128xf32>, vector<128x128xf32>, vector<8x128xf32> -> vector<8x128xf32>
    %cst_39 = arith.constant 9.99999974E-6 : f32
    %88 = vector.broadcast %cst_39 : f32 to vector<8x128xf32>
    %89 = arith.addf %87, %88 : vector<8x128xf32>
    %90 = math.rsqrt %89 : vector<8x128xf32>
    %91 = arith.mulf %85, %90 : vector<8x128xf32>
    %c7 = arith.constant 7 : index
    %c0_40 = arith.constant 0 : index
    %92 = vector.load %arg9[%c7, %c0_40] : memref<16x128xf32, #tpu.memory_space<vmem>>, vector<1x128xf32>
    %93 = vector.broadcast %92 : vector<1x128xf32> to vector<8x128xf32>
    %94 = arith.mulf %91, %93 : vector<8x128xf32>
    %c8 = arith.constant 8 : index
    %c0_41 = arith.constant 0 : index
    %95 = vector.load %arg9[%c8, %c0_41] : memref<16x128xf32, #tpu.memory_space<vmem>>, vector<1x128xf32>
    %96 = vector.broadcast %95 : vector<1x128xf32> to vector<8x128xf32>
    %97 = arith.addf %94, %96 : vector<8x128xf32>
    %98 = arith.negf %97 : vector<8x128xf32>
    %99 = math.exp %98 : vector<8x128xf32>
    %cst_42 = arith.constant 1.000000e+00 : f32
    %100 = vector.broadcast %cst_42 : f32 to vector<8x128xf32>
    %101 = arith.addf %100, %99 : vector<8x128xf32>
    %102 = arith.divf %100, %101 : vector<8x128xf32>
    %103 = math.tanh %97 : vector<8x128xf32>
    %104 = vector.extract_strided_slice %102 {offsets = [0, 0], sizes = [8, 32], strides = [1, 1]} : vector<8x128xf32> to vector<8x32xf32>
    %105 = vector.extract_strided_slice %102 {offsets = [0, 32], sizes = [8, 32], strides = [1, 1]} : vector<8x128xf32> to vector<8x32xf32>
    %106 = vector.extract_strided_slice %103 {offsets = [0, 64], sizes = [8, 32], strides = [1, 1]} : vector<8x128xf32> to vector<8x32xf32>
    %107 = vector.extract_strided_slice %102 {offsets = [0, 96], sizes = [8, 32], strides = [1, 1]} : vector<8x128xf32> to vector<8x32xf32>
    %108 = arith.mulf %105, %1 : vector<8x32xf32>
    %109 = arith.mulf %104, %106 : vector<8x32xf32>
    %110 = arith.addf %108, %109 : vector<8x32xf32>
    %cst_43 = arith.constant dense<0.000000e+00> : vector<8xf32>
    %111 = vector.multi_reduction <add>, %110, %cst_43 [1] : vector<8x32xf32> to vector<8xf32>
    %112 = vector.shape_cast %111 : vector<8xf32> to vector<8x1xf32>
    %cst_44 = arith.constant 3.200000e+01 : f32
    %113 = vector.broadcast %cst_44 : f32 to vector<8x1xf32>
    %114 = arith.divf %112, %113 : vector<8x1xf32>
    %115 = vector.broadcast %114 : vector<8x1xf32> to vector<8x32xf32>
    %116 = arith.subf %110, %115 : vector<8x32xf32>
    %117 = arith.mulf %116, %116 : vector<8x32xf32>
    %cst_45 = arith.constant dense<0.000000e+00> : vector<8xf32>
    %118 = vector.multi_reduction <add>, %117, %cst_45 [1] : vector<8x32xf32> to vector<8xf32>
    %119 = vector.shape_cast %118 : vector<8xf32> to vector<8x1xf32>
    %cst_46 = arith.constant 3.200000e+01 : f32
    %120 = vector.broadcast %cst_46 : f32 to vector<8x1xf32>
    %121 = arith.divf %119, %120 : vector<8x1xf32>
    %122 = vector.broadcast %114 : vector<8x1xf32> to vector<8x32xf32>
    %123 = arith.subf %110, %122 : vector<8x32xf32>
    %cst_47 = arith.constant 9.99999974E-6 : f32
    %124 = vector.broadcast %cst_47 : f32 to vector<8x1xf32>
    %125 = arith.addf %121, %124 : vector<8x1xf32>
    %126 = math.rsqrt %125 : vector<8x1xf32>
    %127 = vector.broadcast %126 : vector<8x1xf32> to vector<8x32xf32>
    %128 = arith.mulf %123, %127 : vector<8x32xf32>
    %c9 = arith.constant 9 : index
    %c0_48 = arith.constant 0 : index
    %129 = vector.load %arg9[%c9, %c0_48] : memref<16x128xf32, #tpu.memory_space<vmem>>, vector<1x32xf32>
    %130 = vector.broadcast %129 : vector<1x32xf32> to vector<8x32xf32>
    %131 = arith.mulf %128, %130 : vector<8x32xf32>
    %c10 = arith.constant 10 : index
    %c0_49 = arith.constant 0 : index
    %132 = vector.load %arg9[%c10, %c0_49] : memref<16x128xf32, #tpu.memory_space<vmem>>, vector<1x32xf32>
    %133 = vector.broadcast %132 : vector<1x32xf32> to vector<8x32xf32>
    %134 = arith.addf %131, %133 : vector<8x32xf32>
    %135 = math.tanh %134 : vector<8x32xf32>
    %136 = arith.mulf %107, %135 : vector<8x32xf32>
    %cst_50 = arith.constant 0.000000e+00 : f32
    %137 = vector.broadcast %cst_50 : f32 to vector<8x32xf32>
    %138 = tpu.concatenate %136, %110, %61, %35, %137 in 1 : vector<8x32xf32>, vector<8x32xf32>, vector<8x16xf32>, vector<8x16xf32>, vector<8x32xf32> -> vector<8x128xf32>
    %c0_51 = arith.constant 0 : index
    %c0_52 = arith.constant 0 : index
    %139 = vector.load %arg10[%c0_51, %c0_52] : memref<8x128xf32, #tpu.memory_space<vmem>>, vector<8x128xf32>
    tpu.vector_store %arg10[%c0_51, %c0_52], %138 {strides = array<i32>} : memref<8x128xf32, #tpu.memory_space<vmem>>, vector<8x128xf32>,
    return
  }
}

</mosaic_0001>

<bundles_post_ra>
// kernel: hyper_lstm_cell.1
= control target key start
LH: loop header
LB: loop body
LE: loop exit
PB: predicated region body
PF: predicated region fallthrough
CT: control target
= control target key end

     0   :  { %15 = vsyncpa [#allocation3], 0  ;;  %s2059_s0 = inlined_call_operand.vmem [shape: f32[8,64], index: 0, kind: input, shape index: {}]   ;;  %s2060_s1 = inlined_call_operand.hbm [shape: f32[8,32], index: 1, kind: input, shape index: {}]   ;;  %s2061_s2 = inlined_call_operand.hbm [shape: f32[8,16], index: 2, kind: input, shape index: {}]   ;;  %s2062_s3 = inlined_call_operand.vmem [shape: f32[64,64], index: 3, kind: input, shape index: {}]   ;;  %s2063_s4 = inlined_call_operand.hbm [shape: f32[64,256], index: 4, kind: input, shape index: {}]   ;;  %s2064_s5 = inlined_call_operand.hbm [shape: f32[16,96], index: 5, kind: input, shape index: {}]   ;;  %s2065_s6 = inlined_call_operand.hbm [shape: f32[96,384], index: 6, kind: input, shape index: {}]   ;;  %s2066_s7 = inlined_call_operand.hbm [shape: f32[64,64], index: 7, kind: input, shape index: {}]   ;;  %s2067_s8 = inlined_call_operand.hbm [shape: f32[128,128], index: 8, kind: input, shape index: {}]   ;;  %s2068_s9 = inlined_call_operand.hbm [shape: f32[16,128], index: 9, kind: input, shape index: {}]   ;;  %s2069_s10 = inlined_call_operand.vmem [shape: f32[8,128], index: 10, kind: output, shape index: {}]  }
   0x1   :  { %16 = vsyncpa [#allocation5], 0 }
   0x2   :  { %17 = vsyncpa [#allocation8], 0 }
   0x3   :  { %18 = vsyncpa [#allocation11], 0 }
   0x4   :  { %19 = vsyncpa [#allocation14], 0  ;;  %s1734_s13 = smov [#allocation4]   ;;  %s1735_s15 = smov [#allocation7]  }
   0x5   :  { %s38_s14 = sshll.u32 %s1734_s13, 4  ;;  %s61_s16 = sshll.u32 %s1735_s15, 4  ;;  %s39_s14 = int_to_ptr.vmem [resolvable:$true] %s38_s14  ;;  %s1811_s16 = int_to_ptr.vmem [resolvable:$true] %s61_s16 }
   0x6   :  { %s1548_s19 = scalar_lea.hbm %s2061_s2, 128 }
   0x7   :  { %p1549_p0 = scmp.ne.s32.totalorder %s2061_s2, %s1548_s19  ;;  %p1552_p1 = scmp.lt.u32.totalorder %s1548_s19, %s2061_s2 }
   0x9   :  { %p1554_p2 = pnand %p1552_p1, %p1549_p0 }
   0xb   :  { %1557 = shalt.err (!%p1554_p2)
}
   0xc   :  { %s1558_s24 = scalar_lea.vmem %s39_s14, 128  ;;  %p1563_p4 = scmp.lt.s32.totalorder %s39_s14, %s39_s14 }
   0xd   :  { %p1559_p3 = scmp.ne.s32.totalorder %s39_s14, %s1558_s24  ;;  %p1564_p5 = scmp.lt.s32.totalorder %s1558_s24, %s1558_s24 }
   0xf   :  { %p1565_p6 = por %p1564_p5, %p1563_p4 }
  0x11   :  { %p1566_p7 = pnand %p1565_p6, %p1559_p3 }
  0x13   :  { %1569 = shalt.err (!%p1566_p7)
}
  0x14   :  { %41 = dma.hbm_to_vmem [thread:$0]  %s2061_s2, 128, %s39_s14, [#allocation5]  }
  0x15   :  { %s1570_s29 = scalar_lea.hbm %s2064_s5, 256 }
  0x16   :  { %p1571_p8 = scmp.ne.s32.totalorder %s2064_s5, %s1570_s29  ;;  %p1574_p9 = scmp.lt.u32.totalorder %s1570_s29, %s2064_s5 }
  0x18   :  { %p1576_p10 = pnand %p1574_p9, %p1571_p8 }
  0x1a   :  { %1579 = shalt.err (!%p1576_p10)
}
  0x1b   :  { %s1580_s15 = scalar_lea.vmem %s1811_s16, 256  ;;  %p1585_p12 = scmp.lt.s32.totalorder %s1811_s16, %s1811_s16 }
  0x1c   :  { %p1581_p11 = scmp.ne.s32.totalorder %s1811_s16, %s1580_s15  ;;  %p1586_p13 = scmp.lt.s32.totalorder %s1580_s15, %s1580_s15 }
  0x1e   :  { %p1587_p0 = por %p1586_p13, %p1585_p12 }
  0x20   :  { %p1588_p1 = pnand %p1587_p0, %p1581_p11 }
  0x22   :  { %1591 = shalt.err (!%p1588_p1)
}
  0x23   :  { %s1736_s2 = smov 128   ;;  %s1737_s14 = smov 8  }
  0x24   :  { %67 = dma.hbm_to_vmem [thread:$0]  %s2064_s5, 256, %s1811_s16, [#allocation8], %s1736_s2, %s1736_s2, %s1737_s14  }
  0x25   :  { %s1738_s19 = smov [#allocation10]   ;;  %s1739_s21 = smov [#allocation2]  }
  0x26   :  { %s85_s20 = sshll.u32 %s1738_s19, 4  ;;  %s28_s22 = sshll.u32 %s1739_s21, 4  ;;  %s86_s20 = int_to_ptr.vmem [resolvable:$true] %s85_s20  ;;  %s29_s22 = int_to_ptr.vmem [resolvable:$true] %s28_s22 }
  0x27   :  { %s1592_s25 = scalar_lea.hbm %s2066_s7, 1024 }
  0x28   :  { %p1593_p2 = scmp.ne.s32.totalorder %s2066_s7, %s1592_s25  ;;  %p1596_p3 = scmp.lt.u32.totalorder %s1592_s25, %s2066_s7 }
  0x2a   :  { %p1598_p4 = pnand %p1596_p3, %p1593_p2 }
  0x2c   :  { %1601 = shalt.err (!%p1598_p4)
}
  0x2d   :  { %s1602_s5 = scalar_lea.vmem %s86_s20, 1024  ;;  %p1607_p6 = scmp.lt.s32.totalorder %s86_s20, %s86_s20 }
  0x2e   :  { %p1603_p5 = scmp.ne.s32.totalorder %s86_s20, %s1602_s5  ;;  %p1608_p7 = scmp.lt.s32.totalorder %s1602_s5, %s1602_s5 }
  0x30   :  { %p1609_p8 = por %p1608_p7, %p1607_p6 }
  0x32   :  { %p1610_p9 = pnand %p1609_p8, %p1603_p5 }
  0x34   :  { %1613 = shalt.err (!%p1610_p9)
}
  0x35   :  { %91 = dma.hbm_to_vmem [thread:$0]  %s2066_s7, 1024, %s86_s20, [#allocation11], %s1736_s2, %s1736_s2, %s1737_s14  }
  0x36   :  { %s1614_s13 = scalar_lea.hbm %s2060_s1, 128 }
  0x37   :  { %p1615_p10 = scmp.ne.s32.totalorder %s2060_s1, %s1614_s13  ;;  %p1618_p11 = scmp.lt.u32.totalorder %s1614_s13, %s2060_s1 }
  0x39   :  { %p1620_p12 = pnand %p1618_p11, %p1615_p10 }
  0x3b   :  { %1623 = shalt.err (!%p1620_p12)
}
  0x3c   :  { %s1624_s21 = scalar_lea.vmem %s29_s22, 128  ;;  %p1629_p0 = scmp.lt.s32.totalorder %s29_s22, %s29_s22 }
  0x3d   :  { %p1625_p13 = scmp.ne.s32.totalorder %s29_s22, %s1624_s21  ;;  %p1630_p1 = scmp.lt.s32.totalorder %s1624_s21, %s1624_s21 }
  0x3f   :  { %p1631_p2 = por %p1630_p1, %p1629_p0 }
  0x41   :  { %p1632_p3 = pnand %p1631_p2, %p1625_p13 }
  0x43   :  { %1635 = shalt.err (!%p1632_p3)
}
  0x44   :  { %31 = dma.hbm_to_vmem [thread:$0]  %s2060_s1, 128, %s29_s22, [#allocation3]  }
  0x45   :  { %s1740_s23 = smov [#allocation6]   ;;  %s1636_s27 = scalar_lea.hbm %s2063_s4, 2048 }
  0x46   :  { %s49_s24 = sshll.u32 %s1740_s23, 4  ;;  %p1637_p4 = scmp.ne.s32.totalorder %s2063_s4, %s1636_s27  ;;  %s50_s24 = int_to_ptr.vmem [resolvable:$true] %s49_s24 }
  0x47   :  { %p1640_p5 = scmp.lt.u32.totalorder %s1636_s27, %s2063_s4 }
  0x49   :  { %p1642_p6 = pnand %p1640_p5, %p1637_p4 }
  0x4b   :  { %1645 = shalt.err (!%p1642_p6)
}
  0x4c   :  { %s1646_s30 = scalar_lea.vmem %s50_s24, 2048  ;;  %p1651_p8 = scmp.lt.s32.totalorder %s50_s24, %s50_s24 }
  0x4d   :  { %p1647_p7 = scmp.ne.s32.totalorder %s50_s24, %s1646_s30  ;;  %p1652_p9 = scmp.lt.s32.totalorder %s1646_s30, %s1646_s30 }
  0x4f   :  { %p1653_p10 = por %p1652_p9, %p1651_p8 }
  0x51   :  { %p1654_p11 = pnand %p1653_p10, %p1647_p7 }
  0x53   :  { %1657 = shalt.err (!%p1654_p11)
}
  0x54   :  { %s1741_s1 = smov 256   ;;  %s1742_s22 = smov 16  }
  0x55   :  { %55 = dma.hbm_to_vmem [thread:$0]  %s2063_s4, 2048, %s50_s24, [#allocation5], %s1741_s1, %s1741_s1, %s1742_s22  }
  0x56   :  { %s1743_s13 = smov [#allocation9]   ;;  %s1658_s19 = scalar_lea.hbm %s2065_s6, 4608 }
  0x57   :  { %s73_s15 = sshll.u32 %s1743_s13, 4  ;;  %p1659_p12 = scmp.ne.s32.totalorder %s2065_s6, %s1658_s19  ;;  %s74_s15 = int_to_ptr.vmem [resolvable:$true] %s73_s15 }
  0x58   :  { %p1662_p13 = scmp.lt.u32.totalorder %s1658_s19, %s2065_s6 }
  0x5a   :  { %p1664_p0 = pnand %p1662_p13, %p1659_p12 }
  0x5c   :  { %1667 = shalt.err (!%p1664_p0)
}
  0x5d   :  { %s1668_s25 = scalar_lea.vmem %s74_s15, 4608  ;;  %p1673_p2 = scmp.lt.s32.totalorder %s74_s15, %s74_s15 }
  0x5e   :  { %p1669_p1 = scmp.ne.s32.totalorder %s74_s15, %s1668_s25  ;;  %p1674_p3 = scmp.lt.s32.totalorder %s1668_s25, %s1668_s25 }
  0x60   :  { %p1675_p4 = por %p1674_p3, %p1673_p2 }
  0x62   :  { %p1676_p5 = pnand %p1675_p4, %p1669_p1 }
  0x64   :  { %1679 = shalt.err (!%p1676_p5)
}
  0x65   :  { %s1744_s4 = smov 384   ;;  %s1745_s24 = smov 24  }
  0x66   :  { %79 = dma.hbm_to_vmem [thread:$0]  %s2065_s6, 4608, %s74_s15, [#allocation8], %s1744_s4, %s1744_s4, %s1745_s24  }
  0x67   :  { %s1746_s28 = smov [#allocation12]   ;;  %s1747_s5 = smov [#allocation13]  }
  0x68   :  { %s97_s29 = sshll.u32 %s1746_s28, 4  ;;  %s109_s16 = sshll.u32 %s1747_s5, 4  ;;  %s98_s29 = int_to_ptr.vmem [resolvable:$true] %s97_s29  ;;  %s1897_s16 = int_to_ptr.vmem [resolvable:$true] %s109_s16 }
  0x69   :  { %s1680_s11 = scalar_lea.hbm %s2067_s8, 2048 }
  0x6a   :  { %p1681_p6 = scmp.ne.s32.totalorder %s2067_s8, %s1680_s11  ;;  %p1684_p7 = scmp.lt.u32.totalorder %s1680_s11, %s2067_s8 }
  0x6c   :  { %p1686_p8 = pnand %p1684_p7, %p1681_p6 }
  0x6e   :  { %1689 = shalt.err (!%p1686_p8)
}
  0x6f   :  { %s1690_s6 = scalar_lea.vmem %s98_s29, 2048  ;;  %p1695_p10 = scmp.lt.s32.totalorder %s98_s29, %s98_s29 }
  0x70   :  { %p1691_p9 = scmp.ne.s32.totalorder %s98_s29, %s1690_s6  ;;  %p1696_p11 = scmp.lt.s32.totalorder %s1690_s6, %s1690_s6 }
  0x72   :  { %p1697_p12 = por %p1696_p11, %p1695_p10 }
  0x74   :  { %p1698_p13 = pnand %p1697_p12, %p1691_p9 }
  0x76   :  { %1701 = shalt.err (!%p1698_p13)
}
  0x77   :  { %103 = dma.hbm_to_vmem [thread:$0]  %s2067_s8, 2048, %s98_s29, [#allocation11], %s1736_s2, %s1736_s2, %s1737_s14  }
  0x78   :  { %s1702_s20 = scalar_lea.hbm %s2068_s9, 256 }
  0x79   :  { %p1703_p0 = scmp.ne.s32.totalorder %s2068_s9, %s1702_s20  ;;  %p1706_p1 = scmp.lt.u32.totalorder %s1702_s20, %s2068_s9 }
  0x7b   :  { %p1708_p2 = pnand %p1706_p1, %p1703_p0 }
  0x7d   :  { %1711 = shalt.err (!%p1708_p2)
}
  0x7e   :  { %s1712_s26 = scalar_lea.vmem %s1897_s16, 256  ;;  %p1717_p4 = scmp.lt.s32.totalorder %s1897_s16, %s1897_s16 }
  0x7f   :  { %p1713_p3 = scmp.ne.s32.totalorder %s1897_s16, %s1712_s26  ;;  %p1718_p5 = scmp.lt.s32.totalorder %s1712_s26, %s1712_s26 }
  0x81   :  { %p1719_p6 = por %p1718_p5, %p1717_p4 }
  0x83   :  { %p1720_p7 = pnand %p1719_p6, %p1713_p3 }
  0x85   :  { %1723 = shalt.err (!%p1720_p7)
}
  0x86   :  { %115 = dma.hbm_to_vmem [thread:$0]  %s2068_s9, 256, %s1897_s16, [#allocation14], %s1736_s2, %s1736_s2, %s1737_s14  }
  0x87   :  { %1724 = dma.done.wait [#allocation3], 128  }
  0x88   :  { %1725 = vsyncadd [#allocation3], 4294967168 }
  0x89   :  { %1726 = dma.done.wait [#allocation5], 2176  }
  0x8a   :  { %1727 = vsyncadd [#allocation5], 4294965120 }
  0x8b   :  { %1728 = dma.done.wait [#allocation8], 4864  }
  0x8c   :  { %1729 = vsyncadd [#allocation8], 4294962432 }
  0x8d   :  { %1730 = dma.done.wait [#allocation11], 3072  }
  0x8e   :  { %1731 = vsyncadd [#allocation11], 4294964224 }
  0x8f   :  { %1732 = dma.done.wait [#allocation14], 256  }
  0x90   :  { %1733 = vsyncadd [#allocation14], 4294967040  ;;  %v1748_v0 = vmov 0.0|0.0   ;;  %vm1749_vm0 = vmmov 0   ;;  %v1750_v1 = vmov 0.0   ;;  %v143_v2 = vld [vmem:[%s2062_s3] sm:$0xff] }
  0x91   :  { %1357 = vmatprep.subr.bf16.mxu0 %v1748_v0  ;;  %1212 = vmatprep.mubr.msk.f32.mxu0 %vm1749_vm0, %v1750_v1  ;;  %v144_v3 = vld [vmem:[%s2062_s3 + $0x8] sm:$0xff]  ;;  %v145_v4 = vld [vmem:[%s2062_s3 + $0x10] sm:$0xff]  ;;  %v146_v6 = vld [vmem:[%s2062_s3 + $0x18] sm:$0xff]  ;;  %vm156_vm1 = vcmask 523264   ;;  %vm426_vm2 = vcmask 130048   ;;  %s1753_s7 = smov 32  }
  0x92   :  { %1369 = vmatprep.subr.bf16.mxu1 %v1748_v0  ;;  %1231 = vmatprep.mubr.msk.f32.mxu1 %vm1749_vm0, %v1750_v1  ;;  %v1358_v5 = vpack.c.bf16 %v144_v3, %v143_v2  ;;  %v1361_v7 = vpack.c.bf16 %v146_v6, %v145_v4  ;;  %v230_v8 = vld [vmem:[#allocation10] sm:$0xff]  ;;  %v231_v9 = vld [vmem:[#allocation10 + $0x8] sm:$0xff]  ;;  %v232_v10 = vld [vmem:[#allocation10 + $0x10] sm:$0xff]  ;;  %s1754_s20 = smov 80   ;;  %vm589_vm3 = vcmask 785408   ;;  %s1755_s23 = smov 64  }
  0x93   :  { %v147_v11 = vld [vmem:[%s2062_s3 + $0x20] sm:$0xff]  ;;  %v148_v12 = vld [vmem:[%s2062_s3 + $0x28] sm:$0xff]  ;;  %v1370_v13 = vpack.c.bf16 %v231_v9, %v230_v8  ;;  %v233_v14 = vld [vmem:[#allocation10 + $0x18] sm:$0xff]  ;;  %vm1029_vm4 = vcmask 261120   ;;  %vm1086_vm5 = vcmask 654336  }
  0x94   :  { %1359 = vmatpush3.bf16.msra.mxu0 %v1358_v5  ;;  %v1373_v15 = vpack.c.bf16 %v233_v14, %v232_v10  ;;  %v1364_v16 = vpack.c.bf16 %v148_v12, %v147_v11  ;;  %v234_v17 = vld [vmem:[#allocation10 + $0x20] sm:$0xff]  ;;  %v235_v18 = vld [vmem:[#allocation10 + $0x28] sm:$0xff]  ;;  %v149_v19 = vld [vmem:[%s2062_s3 + $0x30] sm:$0xff] }
  0x95   :  { %1360 = vmatprep.subr.bf16.mxu0 %v1748_v0  ;;  %1371 = vmatpush3.bf16.msra.mxu1 %v1370_v13  ;;  %v150_v20 = vld [vmem:[%s2062_s3 + $0x38] sm:$0xff]  ;;  %v1376_v21 = vpack.c.bf16 %v235_v18, %v234_v17  ;;  %v1972_v23 = vld [vmem:[%s2059_s0] sm:$0xff]  ;;  %v236_v24 = vld [vmem:[#allocation10 + $0x30] sm:$0xff]  ;;  %s1751_s0 = smov 96   ;;  %s1752_s3 = smov 112  }
  0x96   :  { %1372 = vmatprep.subr.bf16.mxu1 %v1748_v0  ;;  %v1367_v22 = vpack.c.bf16 %v150_v20, %v149_v19  ;;  %v237_v25 = vld [vmem:[#allocation10 + $0x38] sm:$0xff]  ;;  %v1099_v27 = vld [vmem:[#allocation13] ss:$0 sm:$0xff]  ;;  %v1103_v39 = vld [vmem:[#allocation13 + $0x1] ss:$0 sm:$0xff] }
  0x97   :  { %v1379_v26 = vpack.c.bf16 %v237_v25, %v236_v24  ;;  %v1104_v41 = vld [vmem:[#allocation13 + $0x2] ss:$0 sm:$0xff]  ;;  %v142_v45 = vld [vmem:[#allocation4] sm:$0xff]  ;;  %v1106_v58 = vld [vmem:[#allocation13 + $0x3] ss:$0 sm:$0xff] }
  0x98   :  { %1362 = vmatpush3.bf16.msra.mxu0 %v1361_v7  ;;  %v1107_v3 = vld [vmem:[#allocation13 + $0x4] ss:$0 sm:$0xff]  ;;  %v472_v14 = vld [vmem:[#allocation7 + $0x8] sm:$0xff]  ;;  %v554_v17 = vld [vmem:[#allocation9 + $0x8] sm:$0xff] }
  0x99   :  { %1363 = vmatprep.subr.bf16.mxu0 %v1748_v0  ;;  %1374 = vmatpush3.bf16.msra.mxu1 %v1373_v15  ;;  %v557_v18 = vld [vmem:[#allocation9 + $0x20] sm:$0xff]  ;;  %v555_v20 = vld [vmem:[#allocation9 + $0x10] sm:$0xff]  ;;  %v564_v25 = vld [vmem:[#allocation9 + $0x58] sm:$0xff] }
  0x9a   :  { %1375 = vmatprep.subr.bf16.mxu1 %v1748_v0  ;;  %v1396_v19 = vpack.c.bf16 %v557_v18, %v554_v17  ;;  %v561_v24 = vld [vmem:[#allocation9 + $0x40] sm:$0xff]  ;;  %v740_v18 = vld [vmem:[#allocation6] sm:$0xff] }
  0x9b   :  { %v1108_v17 = vld [vmem:[#allocation13 + $0x5] ss:$0 sm:$0xff] }
  0x9c   :  { %1365 = vmatpush3.bf16.msra.mxu0 %v1364_v16 }
  0x9d   :  { %1366 = vmatprep.subr.bf16.mxu0 %v1748_v0  ;;  %1377 = vmatpush3.bf16.msra.mxu1 %v1376_v21 }
  0x9e   :  { %1378 = vmatprep.subr.bf16.mxu1 %v1748_v0 }
  0xa0   :  { %1368 = vmatpush3.bf16.msra.mxu0 %v1367_v22 }
  0xa1   :  { %1381 = vmatprep.subr.bf16.mxu0 %v1748_v0  ;;  %1380 = vmatpush3.bf16.msra.mxu1 %v1379_v26 }
  0xa2   :  { %1393 = vmatprep.subr.bf16.mxu1 %v1748_v0 }
  0xa3   :  { %1213 = vmatmul.mubr.msk.f32.vlgmr.msra.gmra.mrb[0].mxu0 %vm156_vm1, %v1972_v23 }
  0xa4   :  { %1383 = vmatpush3.bf16.msra.mxu0 %v1370_v13  ;;  %1250 = vmatprep.mubr.msk.f32.mxu0 %vm1749_vm0, %v1750_v1  ;;  %v471_v13 = vld [vmem:[#allocation7] sm:$0xff] }
  0xa5   :  { %1384 = vmatprep.subr.bf16.mxu0 %v1748_v0 }
  0xa8   :  { %1386 = vmatpush3.bf16.msra.mxu0 %v1373_v15  ;;  %v1394_v15 = vpack.c.bf16 %v472_v14, %v471_v13  ;;  %v741_v14 = vld [vmem:[#allocation6 + $0x8] sm:$0xff] }
  0xa9   :  { %1387 = vmatprep.subr.bf16.mxu0 %v1748_v0 }
  0xac   :  { %1389 = vmatpush3.bf16.msra.mxu0 %v1376_v21  ;;  %v558_v21 = vld [vmem:[#allocation9 + $0x28] sm:$0xff] }
  0xad   :  { %1390 = vmatprep.subr.bf16.mxu0 %v1748_v0  ;;  %v1421_v22 = vpack.c.bf16 %v558_v21, %v555_v20  ;;  %v745_v20 = vld [vmem:[#allocation6 + $0x28] sm:$0xff]  ;;  %v747_v21 = vld [vmem:[#allocation6 + $0x38] sm:$0xff] }
  0xb0   :  { %1392 = vmatpush3.bf16.msra.mxu0 %v1379_v26  ;;  %v1424_v26 = vpack.c.bf16 %v564_v25, %v561_v24  ;;  %v832_v24 = vld [vmem:[#allocation12 + $0x8] sm:$0xff] }
  0xb1   :  { %1420 = vmatprep.subr.bf16.mxu0 %v1748_v0 }
 0x176   :  { %v226_v28 = vpop.f32.mrb[0].mxu0 }
 0x177   :  { %v227_v29 = vadd.f32 %v1099_v27, %v226_v28  ;;  %v1214_v30 = vpop.f32.mrb[1].mxu0  ;;  %v567_v27 = vld [vmem:[#allocation9 + $0x70] sm:$0xff]  ;;  %v570_v28 = vld [vmem:[#allocation9 + $0x88] sm:$0xff] }
 0x178   :  { %v1427_v30 = vpack.c.bf16 %v570_v28, %v567_v27 }
 0x179   :  { %1232 = vmatmul.mubr.msk.f32.vlgmr.msra.gmra.mrb[0].mxu1 %vm156_vm1, %v227_v29 }
 0x17a   :  { %1257 = vmatprep.mubr.msk.f32.mxu1 %vm1749_vm0, %v1750_v1  ;;  %1395 = vmatpush3.bf16.msra.mxu1 %v1394_v15  ;;  %v743_v15 = vld [vmem:[#allocation6 + $0x18] sm:$0xff] }
 0x17b   :  { %1397 = vmatprep.subr.bf16.mxu1 %v1396_v19  ;;  %v742_v19 = vld [vmem:[#allocation6 + $0x10] sm:$0xff] }
 0x24c   :  { %v307_v31 = vpop.f32.mrb[0].mxu1 }
 0x24d   :  { %v311_v32 = vsub.f32 %v227_v29, %v307_v31  ;;  %v1233_v33 = vpop.f32.mrb[1].mxu1 }
 0x24e   :  { %v576_v33 = vld [vmem:[#allocation9 + $0xb8] sm:$0xff] }
 0x24f   :  { %v312_v34 = vmul.f32 %v311_v32, %v311_v32 }
 0x251   :  { %1251 = vmatmul.mubr.msk.f32.vlgmr.msra.gmra.mrb[2].mxu0 %vm156_vm1, %v312_v34 }
 0x252   :  { %1284 = vmatprep.mubr.msk.f32.mxu0 %vm1749_vm0, %v1750_v1  ;;  %1422 = vmatpush3.bf16.msra.mxu0 %v1421_v22  ;;  %v831_v22 = vld [vmem:[#allocation12] sm:$0xff] }
 0x253   :  { %1423 = vmatprep.subr.bf16.mxu0 %v1748_v0 }
 0x256   :  { %1425 = vmatpush3.bf16.msra.mxu0 %v1424_v26  ;;  %v1440_v26 = vpack.c.bf16 %v742_v19, %v740_v18 }
 0x257   :  { %1426 = vmatprep.subr.bf16.mxu0 %v1748_v0 }
 0x25a   :  { %1428 = vmatpush3.bf16.msra.mxu0 %v1427_v30  ;;  %v744_v30 = vld [vmem:[#allocation6 + $0x20] sm:$0xff] }
 0x25b   :  { %1429 = vmatprep.subr.bf16.mxu0 %v1748_v0 }
 0x324   :  { %v382_v35 = vpop.f32.mrb[2].mxu0 }
 0x325   :  { %v383_v36 = vadd.f32 1e-05, %v382_v35  ;;  %v1252_v37 = vpop.f32.mrb[3].mxu0  ;;  %v579_v35 = vld [vmem:[#allocation9 + $0xd0] sm:$0xff] }
 0x327   :  { %1524 = vrsqrt.f32 %v383_v36  ;;  %v582_v36 = vld [vmem:[#allocation9 + $0xe8] sm:$0xff] }
 0x328   :  { %v1433_v37 = vpack.c.bf16 %v582_v36, %v579_v35  ;;  %v751_v35 = vld [vmem:[#allocation6 + $0x58] sm:$0xff]  ;;  %v833_v36 = vld [vmem:[#allocation12 + $0x10] sm:$0xff] }
 0x331   :  { %v1525_v38 = vpop.eup %1524 }
 0x332   :  { %v387_v40 = vmul.f32 %v1525_v38, %v311_v32  ;;  %v573_v32 = vld [vmem:[#allocation9 + $0xa0] sm:$0xff] }
 0x333   :  { %v1430_v34 = vpack.c.bf16 %v576_v33, %v573_v32  ;;  %v553_v38 = vld [vmem:[#allocation9] sm:$0xff]  ;;  %v749_v33 = vld [vmem:[#allocation6 + $0x48] sm:$0xff] }
 0x334   :  { %v393_v42 = vmul.f32 %v1103_v39, %v387_v40  ;;  %v556_v39 = vld [vmem:[#allocation9 + $0x18] sm:$0xff]  ;;  %v746_v32 = vld [vmem:[#allocation6 + $0x30] sm:$0xff] }
 0x335   :  { %1431 = vmatpush3.bf16.msra.mxu0 %v1430_v34  ;;  %v560_v40 = vld [vmem:[#allocation9 + $0x38] sm:$0xff]  ;;  %v1455_v34 = vpack.c.bf16 %v832_v24, %v831_v22 }
 0x336   :  { %v399_v43 = vadd.f32 %v1104_v41, %v393_v42  ;;  %1432 = vmatprep.subr.bf16.mxu0 %v1748_v0  ;;  %v563_v41 = vld [vmem:[#allocation9 + $0x50] sm:$0xff]  ;;  %v1398_v42 = vpack.c.bf16 %v556_v39, %v553_v38  ;;  %v1444_v38 = vpack.c.bf16 %v746_v32, %v744_v30  ;;  %v1446_v39 = vpack.c.bf16 %v751_v35, %v749_v33 }
 0x338   :  { %1526 = vtanh.f32 %v399_v43  ;;  %v1105_v46 = vmul.f32 -1.442695, %v399_v43  ;;  %v1400_v43 = vpack.c.bf16 %v563_v41, %v560_v40  ;;  %v748_v40 = vld [vmem:[#allocation6 + $0x40] sm:$0xff]  ;;  %v750_v41 = vld [vmem:[#allocation6 + $0x50] sm:$0xff] }
 0x339   :  { %1434 = vmatpush3.bf16.msra.mxu0 %v1433_v37  ;;  %v834_v37 = vld [vmem:[#allocation12 + $0x18] sm:$0xff] }
 0x33a   :  { %1528 = vpow2.f32 %v1105_v46  ;;  %1435 = vmatprep.subr.bf16.mxu0 %v1748_v0 }
 0x342   :  { %v1527_v44 = vpop.eup %1526 }
 0x343   :  { %413 = vrot.lane.b32.xlu0 %v1527_v44, %s1751_s0  ;;  %v559_v44 = vld [vmem:[#allocation9 + $0x30] sm:$0xff] }
 0x344   :  { %v1529_v47 = vpop.eup %1528 }
 0x345   :  { %v403_v48 = vadd.f32 1.0, %v1529_v47  ;;  %v566_v47 = vld [vmem:[#allocation9 + $0x68] sm:$0xff] }
 0x347   :  { %408 = vrot.lane.b32.xlu0 %v142_v45, %s1742_s22  ;;  %1530 = vrcp.f32 %v403_v48  ;;  %v562_v45 = vld [vmem:[#allocation9 + $0x48] sm:$0xff]  ;;  %v569_v48 = vld [vmem:[#allocation9 + $0x80] sm:$0xff] }
 0x351   :  { %v1531_v49 = vpop.eup %1530 }
 0x3b5   :  { %v414_v50 = vpop.permute.xlu0 %413 }
 0x3b6   :  { %v416_v51 = vmul.f32 %v1531_v49, %v414_v50  ;;  %v1404_v50 = vpack.c.bf16 %v569_v48, %v566_v47  ;;  %v752_v47 = vld [vmem:[#allocation6 + $0x60] sm:$0xff]  ;;  %v754_v48 = vld [vmem:[#allocation6 + $0x70] sm:$0xff] }
 0x3b8   :  { %418 = vrot.lane.b32.xlu1 %v416_v51, %s1742_s22  ;;  %v565_v51 = vld [vmem:[#allocation9 + $0x60] sm:$0xff] }
 0x3b9   :  { %v409_v52 = vpop.permute.xlu0 %408 }
 0x3ba   :  { %v411_v53 = vmul.f32 %v1531_v49, %v409_v52  ;;  %v568_v52 = vld [vmem:[#allocation9 + $0x78] sm:$0xff] }
 0x42a   :  { %v419_v54 = vpop.permute.xlu1 %418 }
 0x42b   :  { %v1994_v55 = vadd.f32 %v419_v54, %v411_v53  ;;  %v572_v53 = vld [vmem:[#allocation9 + $0x98] sm:$0xff]  ;;  %v575_v54 = vld [vmem:[#allocation9 + $0xb0] sm:$0xff] }
 0x42d   :  { %423 = vrot.lane.b32.xlu1 %v1994_v55, %s1752_s3 }
 0x49f   :  { %v424_v56 = vpop.permute.xlu1 %423 }
 0x4a0   :  { %v427_v57 = vsel %vm426_vm2, %v424_v56, 0.0  ;;  %v1406_v56 = vpack.c.bf16 %v568_v52, %v565_v51  ;;  %v836_v51 = vld [vmem:[#allocation12 + $0x28] sm:$0xff] }
 0x4a1   :  { %428 = vadd.xlane.f32.xlu0 %v427_v57  ;;  %v1408_v57 = vpack.c.bf16 %v575_v54, %v572_v53  ;;  %v837_v53 = vld [vmem:[#allocation12 + $0x30] sm:$0xff]  ;;  %v838_v54 = vld [vmem:[#allocation12 + $0x38] sm:$0xff] }
 0x4b7   :  { %451 = vrot.lane.b32.xlu0 %v1106_v58, %s1742_s22  ;;  %v571_v58 = vld [vmem:[#allocation9 + $0x90] sm:$0xff] }
 0x52e   :  { %v429_v59 = vpop.xlane.xlu0 %428 }
 0x52f   :  { %v431_v60 = vmul.f32 0.0625, %v429_v59  ;;  %v574_v59 = vld [vmem:[#allocation9 + $0xa8] sm:$0xff] }
 0x531   :  { %v432_v61 = vsub.f32 %v1994_v55, %v431_v60  ;;  %v578_v60 = vld [vmem:[#allocation9 + $0xc8] sm:$0xff] }
 0x532   :  { %v452_v8 = vpop.permute.xlu0 %451 }
 0x533   :  { %v433_v62 = vmul.f32 %v432_v61, %v432_v61 }
 0x535   :  { %435 = vrot.lane.b32.xlu1 %v433_v62, %s1752_s3  ;;  %v1410_v62 = vpack.c.bf16 %v574_v59, %v571_v58  ;;  %v841_v58 = vld [vmem:[#allocation12 + $0x50] sm:$0xff]  ;;  %v842_v59 = vld [vmem:[#allocation12 + $0x58] sm:$0xff] }
 0x5a7   :  { %v436_v63 = vpop.permute.xlu1 %435 }
 0x5a8   :  { %v438_v2 = vsel %vm426_vm2, %v436_v63, 0.0 }
 0x5a9   :  { %439 = vadd.xlane.f32.xlu1 %v438_v2  ;;  %v577_v2 = vld [vmem:[#allocation9 + $0xc0] sm:$0xff] }
 0x5ba   :  { %461 = vrot.lane.b32.xlu1 %v1107_v3, %s1742_s22  ;;  %v580_v3 = vld [vmem:[#allocation9 + $0xd8] sm:$0xff] }
 0x636   :  { %v440_v4 = vpop.xlane.xlu1 %439 }
 0x637   :  { %v441_v5 = vmul.f32 0.0625, %v440_v4  ;;  %v584_v4 = vld [vmem:[#allocation9 + $0xf8] sm:$0xff] }
 0x639   :  { %v442_v6 = vadd.f32 1e-05, %v441_v5  ;;  %v587_v5 = vld [vmem:[#allocation9 + $0x110] sm:$0xff] }
 0x63a   :  { %v462_v10 = vpop.permute.xlu1 %461 }
 0x63b   :  { %1532 = vrsqrt.f32 %v442_v6  ;;  %v1414_v6 = vpack.c.bf16 %v580_v3, %v577_v2  ;;  %v845_v2 = vld [vmem:[#allocation12 + $0x70] sm:$0xff]  ;;  %v846_v3 = vld [vmem:[#allocation12 + $0x78] sm:$0xff] }
 0x645   :  { %v1533_v7 = vpop.eup %1532 }
 0x646   :  { %v444_v9 = vmul.f32 %v1533_v7, %v432_v61  ;;  %v581_v61 = vld [vmem:[#allocation9 + $0xe0] sm:$0xff]  ;;  %v1416_v7 = vpack.c.bf16 %v587_v5, %v584_v4  ;;  %v1476_v4 = vpack.c.bf16 %v846_v3, %v845_v2 }
 0x647   :  { %v1412_v63 = vpack.c.bf16 %v581_v61, %v578_v60  ;;  %v1470_v60 = vpack.c.bf16 %v842_v59, %v841_v58  ;;  %v843_v61 = vld [vmem:[#allocation12 + $0x60] sm:$0xff] }
 0x648   :  { %v454_v11 = vmul.f32 %v452_v8, %v444_v9  ;;  %v583_v8 = vld [vmem:[#allocation9 + $0xf0] sm:$0xff]  ;;  %v586_v9 = vld [vmem:[#allocation9 + $0x108] sm:$0xff] }
 0x64a   :  { %v464_v12 = vadd.f32 %v462_v10, %v454_v11  ;;  %v1418_v10 = vpack.c.bf16 %v586_v9, %v583_v8  ;;  %v585_v11 = vld [vmem:[#allocation9 + $0x100] sm:$0xff] }
 0x64c   :  { %1534 = vtanh.f32 %v464_v12  ;;  %v588_v12 = vld [vmem:[#allocation9 + $0x118] sm:$0xff] }
 0x64d   :  { %v1436_v13 = vpack.c.bf16 %v588_v12, %v585_v11 }
 0x64f   :  { %1437 = vmatpush3.bf16.msra.mxu0 %v1436_v13 }
 0x650   :  { %1454 = vmatprep.subr.bf16.mxu0 %v1748_v0 }
 0x656   :  { %v1535_v16 = vpop.eup %1534 }
 0x657   :  { %467 = vrot.lane.b32.xlu0 %v1535_v16, %s1753_s7  ;;  %v1438_v16 = vpack.c.bf16 %v743_v15, %v741_v14 }
 0x6c9   :  { %v468_v29 = vpop.permute.xlu0 %467 }
 0x6ca   :  { %v2005_v31 = vmul.f32 %v1531_v49, %v468_v29  ;;  %v1402_v49 = vpack.c.bf16 %v562_v45, %v559_v44  ;;  %v1442_v29 = vpack.c.bf16 %v747_v21, %v745_v20  ;;  %v755_v44 = vld [vmem:[#allocation6 + $0x78] sm:$0xff]  ;;  %v1448_v45 = vpack.c.bf16 %v750_v41, %v748_v40 }
 0x6cc   :  { %479 = vrot.lane.b32.xlu0 %v2005_v31, %s1754_s20 }
 0x73e   :  { %v480_v46 = vpop.permute.xlu0 %479 }
 0x73f   :  { %1258 = vmatmul.mubr.msk.f32.vlgmr.msra.gmra.mrb[2].mxu1 %vm426_vm2, %v480_v46 }
 0x740   :  { %1399 = vmatpush1.bf16.msra.mxu1 %v1398_v42  ;;  %657 = vmatprep.mubr.f32.mxu1 %v1750_v1  ;;  %v1458_v42 = vpack.c.bf16 %v834_v37, %v833_v36 }
 0x741   :  { %1401 = vmatprep.subr.bf16.mxu1 %v1400_v43  ;;  %v753_v43 = vld [vmem:[#allocation6 + $0x68] sm:$0xff] }
 0x742   :  { %v1450_v46 = vpack.c.bf16 %v755_v44, %v753_v43 }
 0x744   :  { %1403 = vmatpush1.bf16.msra.mxu1 %v1402_v49  ;;  %v1452_v49 = vpack.c.bf16 %v754_v48, %v752_v47 }
 0x745   :  { %1405 = vmatprep.subr.bf16.mxu1 %v1404_v50  ;;  %v835_v50 = vld [vmem:[#allocation12 + $0x20] sm:$0xff] }
 0x746   :  { %v1461_v52 = vpack.c.bf16 %v836_v51, %v835_v50 }
 0x748   :  { %1407 = vmatpush1.bf16.msra.mxu1 %v1406_v56  ;;  %v1464_v56 = vpack.c.bf16 %v838_v54, %v837_v53 }
 0x749   :  { %1409 = vmatprep.subr.bf16.mxu1 %v1408_v57  ;;  %v840_v57 = vld [vmem:[#allocation12 + $0x48] sm:$0xff] }
 0x74c   :  { %1411 = vmatpush1.bf16.msra.mxu1 %v1410_v62  ;;  %v844_v62 = vld [vmem:[#allocation12 + $0x68] sm:$0xff] }
 0x74d   :  { %1413 = vmatprep.subr.bf16.mxu1 %v1412_v63  ;;  %v1473_v63 = vpack.c.bf16 %v844_v62, %v843_v61 }
 0x750   :  { %1415 = vmatpush1.bf16.msra.mxu1 %v1414_v6 }
 0x751   :  { %1417 = vmatprep.subr.bf16.mxu1 %v1416_v7 }
 0x754   :  { %1419 = vmatpush1.bf16.msra.mxu1 %v1418_v10  ;;  %v1112_v10 = vld [vmem:[#allocation13 + $0x6] ss:$0 sm:$0xff] }
 0x755   :  { %1439 = vmatprep.subr.bf16.mxu1 %v1438_v16 }
 0x812   :  { %v549_v25 = vpop.f32.mrb[2].mxu1 }
 0x813   :  { %v550_v27 = vadd.f32 %v1108_v17, %v549_v25  ;;  %v1259_v28 = vpop.f32.mrb[3].mxu1  ;;  %v141_v17 = vld [vmem:[#allocation2] sm:$0xff] }
 0x814   :  { %1011 = vrot.lane.b32.xlu0 %v141_v17, %s1753_s7  ;;  %v1115_v28 = vld [vmem:[#allocation13 + $0x8] ss:$0 sm:$0xff] }
 0x815   :  { %1110 = vmatmul.mubr.msk.f32.vlgmr.msra.gmra.mrb[4].mxu1 %vm589_vm3, %v550_v27  ;;  %1285 = vmatmul.mubr.msk.f32.vlgmr.msra.gmra.mrb[4].mxu0 %vm589_vm3, %v550_v27 }
 0x816   :  { %1441 = vmatpush1.bf16.msra.mxu1 %v1440_v26  ;;  %820 = vmatprep.mubr.f32.mxu1 %v1750_v1  ;;  %v1114_v26 = vld [vmem:[#allocation13 + $0x7] ss:$0 sm:$0xff] }
 0x817   :  { %1443 = vmatprep.subr.bf16.mxu1 %v1442_v29  ;;  %1456 = vmatpush3.bf16.msra.mxu0 %v1455_v34 }
 0x818   :  { %1457 = vmatprep.subr.bf16.mxu0 %v1748_v0  ;;  %1319 = vmatprep.mubr.msk.f32.mxu0 %vm1749_vm0, %v1750_v1 }
 0x81a   :  { %1445 = vmatpush1.bf16.msra.mxu1 %v1444_v38 }
 0x81b   :  { %1447 = vmatprep.subr.bf16.mxu1 %v1446_v39  ;;  %1459 = vmatpush3.bf16.msra.mxu0 %v1458_v42 }
 0x81c   :  { %1460 = vmatprep.subr.bf16.mxu0 %v1748_v0 }
 0x81e   :  { %1449 = vmatpush1.bf16.msra.mxu1 %v1448_v45 }
 0x81f   :  { %1451 = vmatprep.subr.bf16.mxu1 %v1450_v46  ;;  %1462 = vmatpush3.bf16.msra.mxu0 %v1461_v52 }
 0x820   :  { %1463 = vmatprep.subr.bf16.mxu0 %v1748_v0 }
 0x822   :  { %1453 = vmatpush1.bf16.msra.mxu1 %v1452_v49  ;;  %v1117_v49 = vld [vmem:[#allocation13 + $0x9] ss:$0 sm:$0xff] }
 0x823   :  { %1478 = vmatprep.subr.bf16.mxu1 %v1748_v0  ;;  %1465 = vmatpush3.bf16.msra.mxu0 %v1464_v56 }
 0x824   :  { %1466 = vmatprep.subr.bf16.mxu0 %v1748_v0 }
 0x825   :  { %1113 = vmatmul.mubr.msk.f32.vlgmr.msra.gmra.mrb[6].mxu1 %vm156_vm1, %v1972_v23  ;;  %v839_v23 = vld [vmem:[#allocation12 + $0x40] sm:$0xff] }
 0x826   :  { %1480 = vmatpush3.bf16.msra.mxu1 %v1455_v34  ;;  %1354 = vmatprep.mubr.msk.f32.mxu1 %vm1749_vm0, %v1750_v1  ;;  %v1467_v1 = vpack.c.bf16 %v840_v57, %v839_v23 }
 0x827   :  { %1481 = vmatprep.subr.bf16.mxu1 %v1748_v0 }
 0x828   :  { %1468 = vmatpush3.bf16.msra.mxu0 %v1467_v1 }
 0x829   :  { %1469 = vmatprep.subr.bf16.mxu0 %v1748_v0 }
 0x82a   :  { %1483 = vmatpush3.bf16.msra.mxu1 %v1458_v42 }
 0x82b   :  { %1484 = vmatprep.subr.bf16.mxu1 %v1748_v0 }
 0x82c   :  { %1471 = vmatpush3.bf16.msra.mxu0 %v1470_v60 }
 0x82d   :  { %1472 = vmatprep.subr.bf16.mxu0 %v1748_v0 }
 0x82e   :  { %1486 = vmatpush3.bf16.msra.mxu1 %v1461_v52  ;;  %v1118_v52 = vld [vmem:[#allocation13 + $0xa] ss:$0 sm:$0xff] }
 0x82f   :  { %1487 = vmatprep.subr.bf16.mxu1 %v1748_v0 }
 0x830   :  { %1474 = vmatpush3.bf16.msra.mxu0 %v1473_v63 }
 0x831   :  { %1475 = vmatprep.subr.bf16.mxu0 %v1748_v0 }
 0x832   :  { %1489 = vmatpush3.bf16.msra.mxu1 %v1464_v56 }
 0x833   :  { %1490 = vmatprep.subr.bf16.mxu1 %v1748_v0 }
 0x834   :  { %1477 = vmatpush3.bf16.msra.mxu0 %v1476_v4 }
 0x836   :  { %1492 = vmatpush3.bf16.msra.mxu1 %v1467_v1 }
 0x837   :  { %1493 = vmatprep.subr.bf16.mxu1 %v1748_v0 }
 0x83a   :  { %1495 = vmatpush3.bf16.msra.mxu1 %v1470_v60 }
 0x83b   :  { %1496 = vmatprep.subr.bf16.mxu1 %v1748_v0 }
 0x83e   :  { %1498 = vmatpush3.bf16.msra.mxu1 %v1473_v63 }
 0x83f   :  { %1499 = vmatprep.subr.bf16.mxu1 %v1748_v0 }
 0x842   :  { %1501 = vmatpush3.bf16.msra.mxu1 %v1476_v4 }
 0x886   :  { %v1012_v39 = vpop.permute.xlu0 %1011 }
 0x8e8   :  { %v659_v5 = vpop.f32.mrb[4].mxu1  ;;  %v730_v6 = vpop.f32.mrb[4].mxu0 }
 0x8e9   :  { %v661_v7 = vpop.f32.mrb[5].mxu1  ;;  %v1286_v8 = vpop.f32.mrb[5].mxu0  ;;  %v739_v14 = vadd.f32 %v1112_v10, %v730_v6 }
 0x8f8   :  { %v822_v9 = vpop.f32.mrb[6].mxu1 }
 0x8f9   :  { %v827_v11 = vmul.f32 %v822_v9, %v659_v5  ;;  %v824_v12 = vpop.f32.mrb[7].mxu1 }
 0x8fa   :  { %v828_v13 = vmul.f32 %v824_v12, %v661_v7 }
 0x8fc   :  { %v829_v15 = vadd.f32 %v828_v13, %v827_v11 }
 0x8fe   :  { %v830_v16 = vadd.f32 %v829_v15, %v739_v14 }
 0x900   :  { %1320 = vmatmul.mubr.f32.vlgmr.msra.gmra.mrb[6].mxu0 %v830_v16 }
 0x9d3   :  { %v913_v0 = vpop.f32.mrb[6].mxu0 }
 0x9d4   :  { %v917_v18 = vsub.f32 %v830_v16, %v913_v0  ;;  %v1321_v19 = vpop.f32.mrb[7].mxu0 }
 0x9d6   :  { %v918_v20 = vmul.f32 %v917_v18, %v917_v18 }
 0x9d8   :  { %1355 = vmatmul.mubr.f32.vlgmr.msra.gmra.mrb[8].mxu1 %v918_v20 }
 0xaab   :  { %v985_v21 = vpop.f32.mrb[8].mxu1 }
 0xaac   :  { %v986_v22 = vadd.f32 1e-05, %v985_v21  ;;  %v1356_v24 = vpop.f32.mrb[9].mxu1 }
 0xaae   :  { %1536 = vrsqrt.f32 %v986_v22 }
 0xab8   :  { %v1537_v25 = vpop.eup %1536 }
 0xab9   :  { %v990_v27 = vmul.f32 %v1537_v25, %v917_v18 }
 0xabb   :  { %v996_v29 = vmul.f32 %v1114_v26, %v990_v27 }
 0xabd   :  { %v1002_v30 = vadd.f32 %v1115_v28, %v996_v29 }
 0xabf   :  { %1538 = vtanh.f32 %v1002_v30  ;;  %v1116_v33 = vmul.f32 -1.442695, %v1002_v30 }
 0xac1   :  { %1540 = vpow2.f32 %v1116_v33 }
 0xac9   :  { %v1539_v32 = vpop.eup %1538 }
 0xaca   :  { %1016 = vrot.lane.b32.xlu1 %v1539_v32, %s1755_s23 }
 0xacb   :  { %v1541_v34 = vpop.eup %1540 }
 0xacc   :  { %v1006_v35 = vadd.f32 1.0, %v1541_v34 }
 0xace   :  { %1542 = vrcp.f32 %v1006_v35 }
 0xad8   :  { %v1543_v36 = vpop.eup %1542 }
 0xad9   :  { %v1014_v40 = vmul.f32 %v1543_v36, %v1012_v39 }
 0xb3c   :  { %v1017_v37 = vpop.permute.xlu1 %1016 }
 0xb3d   :  { %v1019_v38 = vmul.f32 %v1543_v36, %v1017_v37 }
 0xb3f   :  { %1021 = vrot.lane.b32.xlu1 %v1019_v38, %s1753_s7 }
 0xbb1   :  { %v1022_v41 = vpop.permute.xlu1 %1021 }
 0xbb2   :  { %v1024_v42 = vadd.f32 %v1022_v41, %v1014_v40 }
 0xbb4   :  { %1026 = vrot.lane.b32.xlu0 %v1024_v42, %s1751_s0 }
 0xc26   :  { %v1027_v43 = vpop.permute.xlu0 %1026 }
 0xc27   :  { %v1030_v44 = vsel %vm1029_vm4, %v1027_v43, 0.0 }
 0xc28   :  { %1031 = vadd.xlane.f32.xlu1 %v1030_v44 }
 0xc39   :  { %1054 = vrot.lane.b32.xlu1 %v1117_v49, %s1753_s7 }
 0xcb5   :  { %v1032_v45 = vpop.xlane.xlu1 %1031 }
 0xcb6   :  { %v1034_v46 = vmul.f32 0.03125, %v1032_v45 }
 0xcb8   :  { %v1035_v47 = vsub.f32 %v1024_v42, %v1034_v46 }
 0xcb9   :  { %v1055_v57 = vpop.permute.xlu1 %1054 }
 0xcba   :  { %v1036_v48 = vmul.f32 %v1035_v47, %v1035_v47 }
 0xcbc   :  { %1038 = vrot.lane.b32.xlu0 %v1036_v48, %s1751_s0 }
 0xd2e   :  { %v1039_v50 = vpop.permute.xlu0 %1038 }
 0xd2f   :  { %v1041_v51 = vsel %vm1029_vm4, %v1039_v50, 0.0 }
 0xd30   :  { %1042 = vadd.xlane.f32.xlu0 %v1041_v51 }
 0xd46   :  { %1064 = vrot.lane.b32.xlu0 %v1118_v52, %s1753_s7 }
 0xd4a   :  { %1078 = vrot.lane.b32.xlu0 %v2005_v31, %s1742_s22 }
 0xdbd   :  { %v1043_v53 = vpop.xlane.xlu0 %1042 }
 0xdbe   :  { %v1044_v54 = vmul.f32 0.03125, %v1043_v53 }
 0xdc0   :  { %v1045_v56 = vadd.f32 1e-05, %v1044_v54 }
 0xdc1   :  { %v1065_v59 = vpop.permute.xlu0 %1064 }
 0xdc2   :  { %1544 = vrsqrt.f32 %v1045_v56 }
 0xdc5   :  { %v1079_v3 = vpop.permute.xlu0 %1078 }
 0xdcc   :  { %v1545_v23 = vpop.eup %1544 }
 0xdcd   :  { %v1047_v1 = vmul.f32 %v1545_v23, %v1035_v47 }
 0xdcf   :  { %v1057_v58 = vmul.f32 %v1055_v57, %v1047_v1 }
 0xdd1   :  { %v1067_v60 = vadd.f32 %v1065_v59, %v1057_v58 }
 0xdd3   :  { %1546 = vtanh.f32 %v1067_v60 }
 0xddd   :  { %v1547_v61 = vpop.eup %1546 }
 0xdde   :  { %1070 = vrot.lane.b32.xlu1 %v1547_v61, %s1755_s23 }
 0xe50   :  { %v1071_v62 = vpop.permute.xlu1 %1070 }
 0xe51   :  { %v1073_v63 = vmul.f32 %v1543_v36, %v1071_v62 }
 0xe53   :  { %1075 = vrot.lane.b32.xlu1 %v1073_v63, %s1753_s7 }
 0xe57   :  { %1081 = vrot.lane.b32.xlu1 %v1994_v55, %s1755_s23 }
 0xec5   :  { %v1076_v31 = vpop.permute.xlu1 %1075 }
 0xec6   :  { %v1084_v2 = vsel %vm1029_vm4, %v1076_v31, %v1024_v42 }
 0xec7   :  { %v1085_v4 = vsel %vm156_vm1, %v1084_v2, %v1079_v3 }
 0xec9   :  { %v1082_v5 = vpop.permute.xlu1 %1081 }
 0xeca   :  { %v1087_v6 = vsel %vm1086_vm5, %v1085_v4, %v1082_v5 }
 0xecb   :  { %v1088_v7 = vsel %vm589_vm3, %v1087_v6, 0.0 }
 0xecc   :  { %1089 = vst [vmem:[%s2069_s10] sm:$0xff] %v1088_v7 }
 0xecd   :  { %1094 = vsyncpa [#allocation3], 1 }
 0xece   :  { %1095 = vsyncpa [#allocation5], 1 }
 0xecf   :  { %1096 = vsyncpa [#allocation8], 1 }
 0xed0   :  { %1097 = vsyncpa [#allocation11], 1 }
 0xed1   :  { %1098 = vsyncpa [#allocation14], 1 }

</bundles_post_ra>
